<compile_context>
chip_gen: v6e
topology: v6e:2x2x1
jax: 0.10.0
libtpu: 0.0.40
codegen_flags: <defaults>
</compile_context>

<pallas_src>
import jax
import jax.numpy as jnp
from jax import lax
from jax.experimental import pallas as pl
from jax.experimental.pallas import tpu as pltpu


def _round_up(x, m):
    return ((x + m - 1) // m) * m


def _fc_kernel(x_ref, w_ref, b_ref, o_ref):
    # x_ref: (TM, K)   input rows
    # w_ref: (TN, K)   weight tile in native PyTorch (classes, in_features) layout
    # b_ref: (1, TN)   bias tile
    # o_ref: (TM, TN)  output tile
    acc = lax.dot_general(
        x_ref[...], w_ref[...],
        dimension_numbers=(((1,), (1,)), ((), ())),   # contract shared K axis
        preferred_element_type=jnp.float32,
    )
    o_ref[...] = (acc + b_ref[...]).astype(o_ref.dtype)


def resnet_classifier_forward(x, weight, bias, *, tm=None, tn=None):
    """y = flatten(x) @ weight.T + bias  (PyTorch nn.Linear semantics)

    x:      (B, C, H, W) float32   (NCHW, like PyTorch)
    weight: (num_classes, in_features) float32  (PyTorch nn.Linear layout)
    bias:   (num_classes,) float32
    returns (B, num_classes) float32
    """
    B = x.shape[0]
    x2d = x.reshape(B, -1)                      # torch .view(B, -1)
    K = x2d.shape[1]
    N = weight.shape[0]
    assert weight.shape[1] == K

    # Tile sizing: tm covers the whole (padded) batch when possible so each
    # weight block is fetched exactly once; tn targets the 256-wide MXU.
    if tm is None:
        tm = min(_round_up(B, 8), 256)
    if tn is None:
        tn = min(_round_up(N, 128), 256)

    B_pad = _round_up(B, tm)
    N_pad = _round_up(N, tn)

    # Pad remainders (layout glue) -- exact grid coverage + lane-dense stores.
    if B_pad != B:
        x2d = jnp.pad(x2d, ((0, B_pad - B), (0, 0)))
    w = weight
    b2d = bias.reshape(1, N)
    if N_pad != N:
        w = jnp.pad(w, ((0, N_pad - N), (0, 0)))
        b2d = jnp.pad(b2d, ((0, 0), (0, N_pad - N)))

    n_blocks = N_pad // tn
    b_blocks = B_pad // tm
    grid = (n_blocks, b_blocks)                 # N outer -> weight-stationary

    cost = pl.CostEstimate(
        flops=2 * B_pad * K * N_pad,
        transcendentals=0,
        bytes_accessed=4 * (B_pad * K + N_pad * K + N_pad + B_pad * N_pad),
    )

    out = pl.pallas_call(
        _fc_kernel,
        out_shape=jax.ShapeDtypeStruct((B_pad, N_pad), x.dtype),
        grid_spec=pl.GridSpec(
            grid=grid,
            in_specs=[
                pl.BlockSpec((tm, K), lambda j, i: (i, 0)),   # x rows (inner axis)
                pl.BlockSpec((tn, K), lambda j, i: (j, 0)),   # weight rows (outer axis)
                pl.BlockSpec((1, tn), lambda j, i: (0, j)),   # bias slice
            ],
            out_specs=pl.BlockSpec((tm, tn), lambda j, i: (i, j)),
        ),
        compiler_params=pltpu.CompilerParams(
            dimension_semantics=("parallel", "parallel")),
        cost_estimate=cost,
    )(x2d, w, b2d)

    return out[:B, :N]


if __name__ == "__main__":
    # block.expansion = 1  ->  in_features = 512
    # Feature map as produced upstream of the classifier: (B, 512, 1, 1).
    # Deliberately non-divisible B / num_classes to exercise the padding path.
    B = 6
    C, H, W = 512, 1, 1
    num_classes = 10

    key = jax.random.PRNGKey(0)
    kx, kw, kb = jax.random.split(key, 3)

    x = jax.random.normal(kx, (B, C, H, W), dtype=jnp.float32)
    in_features = C * H * W
    bound = 1.0 / (in_features ** 0.5)
    weight = jax.random.uniform(kw, (num_classes, in_features),
                                dtype=jnp.float32, minval=-bound, maxval=bound)
    bias = jax.random.uniform(kb, (num_classes,),
                              dtype=jnp.float32, minval=-bound, maxval=bound)

    y = resnet_classifier_forward(x, weight, bias)
    y = jax.block_until_ready(y)

    # Reference check (plain JAX).
    y_ref = x.reshape(B, -1) @ weight.T + bias
    assert y.shape == (B, num_classes)
    assert jnp.allclose(y, y_ref, atol=1e-4, rtol=1e-4)

    # Second check at a bigger, still non-divisible head (1000 classes) to
    # confirm the tail columns are actually computed.
    num_classes2 = 1000
    weight2 = jax.random.uniform(kw, (num_classes2, in_features),
                                 dtype=jnp.float32, minval=-bound, maxval=bound)
    bias2 = jax.random.uniform(kb, (num_classes2,),
                               dtype=jnp.float32, minval=-bound, maxval=bound)
    y2 = jax.block_until_ready(resnet_classifier_forward(x, weight2, bias2))
    y2_ref = x.reshape(B, -1) @ weight2.T + bias2
    assert y2.shape == (B, num_classes2)
    assert jnp.allclose(y2, y2_ref, atol=1e-4, rtol=1e-4)

    print("KERNEL_OK")
</pallas_src>

<mosaic_0001>
module attributes {stable_mosaic.version = 11 : i64} {
  func.func @_fc_kernel(%arg0: i32, %arg1: i32, %arg2: memref<8x512xf32, #tpu.memory_space<vmem>>, %arg3: memref<128x512xf32, #tpu.memory_space<vmem>>, %arg4: memref<1x128xf32, #tpu.memory_space<vmem>>, %arg5: memref<8x128xf32, #tpu.memory_space<vmem>>) attributes {dimension_semantics = [#tpu.dimension_semantics<parallel>, #tpu.dimension_semantics<parallel>], iteration_bounds = array<i64: 1, 1>, scalar_prefetch = 0 : i64, scratch_operands = 0 : i64, tpu.core_type = #tpu.core_type<tc>, window_params = [{transform_indices = @transform_0, window_bounds = array<i64: 8, 512>}, {transform_indices = @transform_1, window_bounds = array<i64: 128, 512>}, {transform_indices = @transform_2, window_bounds = array<i64: 1, 128>}, {transform_indices = @transform_3, window_bounds = array<i64: 8, 128>}]} {
    %c0 = arith.constant 0 : index
    %c0_0 = arith.constant 0 : index
    %0 = vector.load %arg2[%c0, %c0_0] : memref<8x512xf32, #tpu.memory_space<vmem>>, vector<8x512xf32>
    %c0_1 = arith.constant 0 : index
    %c0_2 = arith.constant 0 : index
    %1 = vector.load %arg3[%c0_1, %c0_2] : memref<128x512xf32, #tpu.memory_space<vmem>>, vector<128x512xf32>
    %cst = arith.constant dense<0.000000e+00> : vector<8x128xf32>
    %2 = tpu.matmul %0, %1, %cst {dimension_numbers = #tpu.dot_dimension_numbers<[1], [1], [0], [0], [0, 0, 1, 0], [], []>} : vector<8x512xf32>, vector<128x512xf32>, vector<8x128xf32> -> vector<8x128xf32>
    %c0_3 = arith.constant 0 : index
    %c0_4 = arith.constant 0 : index
    %3 = vector.load %arg4[%c0_3, %c0_4] : memref<1x128xf32, #tpu.memory_space<vmem>>, vector<1x128xf32>
    %4 = vector.broadcast %3 : vector<1x128xf32> to vector<8x128xf32>
    %5 = arith.addf %2, %4 : vector<8x128xf32>
    %c0_5 = arith.constant 0 : index
    %c0_6 = arith.constant 0 : index
    %6 = vector.load %arg5[%c0_5, %c0_6] : memref<8x128xf32, #tpu.memory_space<vmem>>, vector<8x128xf32>
    tpu.vector_store %arg5[%c0_5, %c0_6], %5 {strides = array<i32>} : memref<8x128xf32, #tpu.memory_space<vmem>>, vector<8x128xf32>,
    return
  }
  func.func @transform_0(%arg0: i32, %arg1: i32) -> (i32, i32) {
    %c0_i32 = arith.constant 0 : i32
    %c0_i32_0 = arith.constant 0 : i32
    return %arg1, %c0_i32 : i32, i32
  }
  func.func @transform_1(%arg0: i32, %arg1: i32) -> (i32, i32) {
    %c0_i32 = arith.constant 0 : i32
    %c0_i32_0 = arith.constant 0 : i32
    return %arg0, %c0_i32 : i32, i32
  }
  func.func @transform_2(%arg0: i32, %arg1: i32) -> (i32, i32) {
    %c0_i32 = arith.constant 0 : i32
    %c0_i32_0 = arith.constant 0 : i32
    return %c0_i32, %arg0 : i32, i32
  }
  func.func @transform_3(%arg0: i32, %arg1: i32) -> (i32, i32) {
    %c0_i32 = arith.constant 0 : i32
    return %arg1, %arg0 : i32, i32
  }
}

</mosaic_0001>

<bundles_post_ra>
// kernel: tpu_custom_call.1
= control target key start
LH: loop header
LB: loop body
LE: loop exit
PB: predicated region body
PF: predicated region fallthrough
CT: control target
= control target key end

     0   :  { %8 = vsyncpa [#allocation3], 0  ;;  %s382_s0 = inlined_call_operand.hbm [shape: f32[8,512], index: 0, kind: input, shape index: {}]   ;;  %s383_s1 = inlined_call_operand.hbm [shape: f32[128,512], index: 1, kind: input, shape index: {}]   ;;  %s384_s2 = inlined_call_operand.vmem [shape: f32[1,128], index: 2, kind: input, shape index: {}]   ;;  %s385_s3 = inlined_call_operand.hbm [shape: f32[8,128], index: 3, kind: output, shape index: {}]  }
   0x1   :  { %9 = vsyncpa [#allocation6], 0 }
   0x2   :  { %10 = vsyncpa [#allocation4], 0  ;;  %s345_s12 = smov [#allocation2]   ;;  %s346_s14 = smov [#allocation5]  }
   0x3   :  { %s17_s13 = sshll.u32 %s345_s12, 4  ;;  %s26_s15 = sshll.u32 %s346_s14, 4  ;;  %s18_s13 = int_to_ptr.vmem [resolvable:$true] %s17_s13  ;;  %s27_s15 = int_to_ptr.vmem [resolvable:$true] %s26_s15 }
   0x4   :  { %s287_s16 = scalar_lea.vmem %s18_s13, 512  ;;  %p292_p1 = scmp.lt.s32.totalorder %s18_s13, %s18_s13 }
   0x5   :  { %p288_p0 = scmp.ne.s32.totalorder %s18_s13, %s287_s16  ;;  %p293_p2 = scmp.lt.s32.totalorder %s287_s16, %s287_s16 }
   0x7   :  { %p294_p3 = por %p293_p2, %p292_p1 }
   0x9   :  { %p295_p4 = pnand %p294_p3, %p288_p0 }
   0xb   :  { %298 = shalt.err (!%p295_p4)
}
   0xc   :  { %20 = dma.hbm_to_vmem [thread:$0]  %s382_s0, 512, %s18_s13, [#allocation3]  }
   0xd   :  { %s307_s19 = scalar_lea.vmem %s27_s15, 8192  ;;  %p312_p6 = scmp.lt.s32.totalorder %s27_s15, %s27_s15 }
   0xe   :  { %p308_p5 = scmp.ne.s32.totalorder %s27_s15, %s307_s19  ;;  %p313_p7 = scmp.lt.s32.totalorder %s307_s19, %s307_s19 }
  0x10   :  { %p314_p8 = por %p313_p7, %p312_p6 }
  0x12   :  { %p315_p9 = pnand %p314_p8, %p308_p5 }
  0x14   :  { %318 = shalt.err (!%p315_p9)
}
  0x15   :  { %s347_s20 = smov 512   ;;  %s348_s21 = smov 32  }
  0x16   :  { %32 = dma.hbm_to_vmem [thread:$0]  %s383_s1, 8192, %s27_s15, [#allocation6], %s347_s20, %s347_s20, %s348_s21  }
  0x17   :  { %339 = dma.done.wait [#allocation3], 512  }
  0x18   :  { %340 = vsyncadd [#allocation3], 4294966784 }
  0x19   :  { %341 = dma.done.wait [#allocation6], 8192  }
  0x1a   :  { %342 = vsyncadd [#allocation6], 4294959104  ;;  %v106_v0 = vld [vmem:[#allocation5 + $0x1e8] sm:$0xff]  ;;  %v108_v1 = vld [vmem:[#allocation5 + $0x1f8] sm:$0xff]  ;;  %s349_s24 = smov [#allocation7]  }
  0x1b   :  { %v105_v2 = vld [vmem:[#allocation5 + $0x1e0] sm:$0xff]  ;;  %116 = vmatprep.subr.mxu0 %v106_v0  ;;  %186 = vmatprep.subr.mxu1 %v108_v1  ;;  %v107_v3 = vld [vmem:[#allocation5 + $0x1f0] sm:$0xff]  ;;  %v102_v4 = vld [vmem:[#allocation5 + $0x1c8] sm:$0xff]  ;;  %s263_s25 = sshll.u32 %s349_s24, 4  ;;  %s264_s25 = int_to_ptr.vmem [resolvable:$true] %s263_s25 }
  0x1c   :  { %v104_v5 = vld [vmem:[#allocation5 + $0x1d8] sm:$0xff]  ;;  %117 = vmatpush1.xpose.msra.mxu0 %v105_v2  ;;  %187 = vmatpush1.xpose.msra.mxu1 %v107_v3  ;;  %v101_v6 = vld [vmem:[#allocation5 + $0x1c0] sm:$0xff]  ;;  %v103_v7 = vld [vmem:[#allocation5 + $0x1d0] sm:$0xff]  ;;  %s319_s26 = scalar_lea.vmem %s264_s25, 128  ;;  %p324_p11 = scmp.lt.s32.totalorder %s264_s25, %s264_s25 }
  0x1d   :  { %118 = vmatprep.subr.mxu0 %v102_v4  ;;  %188 = vmatprep.subr.mxu1 %v104_v5  ;;  %v98_v8 = vld [vmem:[#allocation5 + $0x1a8] sm:$0xff]  ;;  %v100_v9 = vld [vmem:[#allocation5 + $0x1b8] sm:$0xff]  ;;  %v97_v10 = vld [vmem:[#allocation5 + $0x1a0] sm:$0xff]  ;;  %p320_p10 = scmp.ne.s32.totalorder %s264_s25, %s319_s26  ;;  %p325_p12 = scmp.lt.s32.totalorder %s319_s26, %s319_s26 }
  0x1e   :  { %v99_v11 = vld [vmem:[#allocation5 + $0x1b0] sm:$0xff]  ;;  %v94_v12 = vld [vmem:[#allocation5 + $0x188] sm:$0xff]  ;;  %v96_v13 = vld [vmem:[#allocation5 + $0x198] sm:$0xff] }
  0x1f   :  { %v93_v14 = vld [vmem:[#allocation5 + $0x180] sm:$0xff]  ;;  %v95_v15 = vld [vmem:[#allocation5 + $0x190] sm:$0xff]  ;;  %v90_v16 = vld [vmem:[#allocation5 + $0x168] sm:$0xff]  ;;  %p326_p13 = por %p325_p12, %p324_p11 }
  0x20   :  { %119 = vmatpush1.xpose.msra.mxu0 %v101_v6  ;;  %189 = vmatpush1.xpose.msra.mxu1 %v103_v7  ;;  %v92_v17 = vld [vmem:[#allocation5 + $0x178] sm:$0xff]  ;;  %v89_v18 = vld [vmem:[#allocation5 + $0x160] sm:$0xff]  ;;  %v91_v19 = vld [vmem:[#allocation5 + $0x170] sm:$0xff] }
  0x21   :  { %120 = vmatprep.subr.mxu0 %v98_v8  ;;  %190 = vmatprep.subr.mxu1 %v100_v9  ;;  %v86_v20 = vld [vmem:[#allocation5 + $0x148] sm:$0xff]  ;;  %v88_v21 = vld [vmem:[#allocation5 + $0x158] sm:$0xff]  ;;  %v85_v22 = vld [vmem:[#allocation5 + $0x140] sm:$0xff]  ;;  %p327_p0 = pnand %p326_p13, %p320_p10 }
  0x22   :  { %v87_v23 = vld [vmem:[#allocation5 + $0x150] sm:$0xff]  ;;  %v82_v24 = vld [vmem:[#allocation5 + $0x128] sm:$0xff]  ;;  %v84_v25 = vld [vmem:[#allocation5 + $0x138] sm:$0xff] }
  0x23   :  { %v42_v26 = vld [vmem:[#allocation2 + $0x8] sm:$0xff]  ;;  %v44_v27 = vld [vmem:[#allocation2 + $0x18] sm:$0xff]  ;;  %v81_v28 = vld [vmem:[#allocation5 + $0x120] sm:$0xff] }
  0x24   :  { %121 = vmatpush1.xpose.msra.mxu0 %v97_v10  ;;  %191 = vmatpush1.xpose.msra.mxu1 %v99_v11  ;;  %v83_v29 = vld [vmem:[#allocation5 + $0x130] sm:$0xff]  ;;  %v78_v30 = vld [vmem:[#allocation5 + $0x108] sm:$0xff]  ;;  %v80_v31 = vld [vmem:[#allocation5 + $0x118] sm:$0xff] }
  0x25   :  { %122 = vmatprep.subr.mxu0 %v94_v12  ;;  %192 = vmatprep.subr.mxu1 %v96_v13  ;;  %v77_v32 = vld [vmem:[#allocation5 + $0x100] sm:$0xff]  ;;  %v79_v33 = vld [vmem:[#allocation5 + $0x110] sm:$0xff]  ;;  %v74_v34 = vld [vmem:[#allocation5 + $0xe8] sm:$0xff] }
  0x26   :  { %180 = vmatprep.mubr.f32.mxu0 %v42_v26  ;;  %250 = vmatprep.mubr.f32.mxu1 %v44_v27  ;;  %v76_v35 = vld [vmem:[#allocation5 + $0xf8] sm:$0xff]  ;;  %v73_v36 = vld [vmem:[#allocation5 + $0xe0] sm:$0xff]  ;;  %v75_v37 = vld [vmem:[#allocation5 + $0xf0] sm:$0xff] }
  0x27   :  { %v70_v38 = vld [vmem:[#allocation5 + $0xc8] sm:$0xff]  ;;  %v72_v39 = vld [vmem:[#allocation5 + $0xd8] sm:$0xff]  ;;  %v69_v40 = vld [vmem:[#allocation5 + $0xc0] sm:$0xff] }
  0x28   :  { %123 = vmatpush1.xpose.msra.mxu0 %v93_v14  ;;  %193 = vmatpush1.xpose.msra.mxu1 %v95_v15  ;;  %v71_v41 = vld [vmem:[#allocation5 + $0xd0] sm:$0xff]  ;;  %v66_v42 = vld [vmem:[#allocation5 + $0xa8] sm:$0xff]  ;;  %v68_v43 = vld [vmem:[#allocation5 + $0xb8] sm:$0xff] }
  0x29   :  { %124 = vmatprep.subr.mxu0 %v90_v16  ;;  %194 = vmatprep.subr.mxu1 %v92_v17  ;;  %v65_v44 = vld [vmem:[#allocation5 + $0xa0] sm:$0xff]  ;;  %v67_v45 = vld [vmem:[#allocation5 + $0xb0] sm:$0xff]  ;;  %v62_v46 = vld [vmem:[#allocation5 + $0x88] sm:$0xff] }
  0x2a   :  { %v64_v47 = vld [vmem:[#allocation5 + $0x98] sm:$0xff]  ;;  %v61_v48 = vld [vmem:[#allocation5 + $0x80] sm:$0xff]  ;;  %v63_v49 = vld [vmem:[#allocation5 + $0x90] sm:$0xff] }
  0x2b   :  { %v58_v50 = vld [vmem:[#allocation5 + $0x68] sm:$0xff]  ;;  %v60_v51 = vld [vmem:[#allocation5 + $0x78] sm:$0xff]  ;;  %v57_v52 = vld [vmem:[#allocation5 + $0x60] sm:$0xff] }
  0x2c   :  { %125 = vmatpush1.xpose.msra.mxu0 %v89_v18  ;;  %195 = vmatpush1.xpose.msra.mxu1 %v91_v19  ;;  %v59_v53 = vld [vmem:[#allocation5 + $0x70] sm:$0xff]  ;;  %v54_v54 = vld [vmem:[#allocation5 + $0x48] sm:$0xff]  ;;  %v56_v55 = vld [vmem:[#allocation5 + $0x58] sm:$0xff] }
  0x2d   :  { %126 = vmatprep.subr.mxu0 %v86_v20  ;;  %196 = vmatprep.subr.mxu1 %v88_v21  ;;  %v53_v56 = vld [vmem:[#allocation5 + $0x40] sm:$0xff]  ;;  %v55_v57 = vld [vmem:[#allocation5 + $0x50] sm:$0xff]  ;;  %v50_v58 = vld [vmem:[#allocation5 + $0x28] sm:$0xff] }
  0x2e   :  { %v52_v59 = vld [vmem:[#allocation5 + $0x38] sm:$0xff]  ;;  %v49_v60 = vld [vmem:[#allocation5 + $0x20] sm:$0xff]  ;;  %v51_v61 = vld [vmem:[#allocation5 + $0x30] sm:$0xff] }
  0x2f   :  { %v46_v62 = vld [vmem:[#allocation5 + $0x8] sm:$0xff]  ;;  %v48_v63 = vld [vmem:[#allocation5 + $0x18] sm:$0xff]  ;;  %v45_v0 = vld [vmem:[#allocation5] sm:$0xff] }
  0x30   :  { %127 = vmatpush1.xpose.msra.mxu0 %v85_v22  ;;  %197 = vmatpush1.xpose.msra.mxu1 %v87_v23  ;;  %v47_v1 = vld [vmem:[#allocation5 + $0x10] sm:$0xff]  ;;  %v41_v2 = vld [vmem:[#allocation2] sm:$0xff] }
  0x31   :  { %128 = vmatprep.subr.mxu0 %v82_v24  ;;  %198 = vmatprep.subr.mxu1 %v84_v25  ;;  %v43_v3 = vld [vmem:[#allocation2 + $0x10] sm:$0xff]  ;;  %v273_v4 = vld [vmem:[%s384_s2] ss:$0 sm:$0xff] }
  0x34   :  { %129 = vmatpush1.xpose.msra.mxu0 %v81_v28  ;;  %199 = vmatpush1.xpose.msra.mxu1 %v83_v29 }
  0x35   :  { %130 = vmatprep.subr.mxu0 %v78_v30  ;;  %200 = vmatprep.subr.mxu1 %v80_v31 }
  0x38   :  { %131 = vmatpush1.xpose.msra.mxu0 %v77_v32  ;;  %201 = vmatpush1.xpose.msra.mxu1 %v79_v33 }
  0x39   :  { %132 = vmatprep.subr.mxu0 %v74_v34  ;;  %202 = vmatprep.subr.mxu1 %v76_v35 }
  0x3c   :  { %133 = vmatpush1.xpose.msra.mxu0 %v73_v36  ;;  %203 = vmatpush1.xpose.msra.mxu1 %v75_v37 }
  0x3d   :  { %134 = vmatprep.subr.mxu0 %v70_v38  ;;  %204 = vmatprep.subr.mxu1 %v72_v39 }
  0x40   :  { %135 = vmatpush1.xpose.msra.mxu0 %v69_v40  ;;  %205 = vmatpush1.xpose.msra.mxu1 %v71_v41 }
  0x41   :  { %136 = vmatprep.subr.mxu0 %v66_v42  ;;  %206 = vmatprep.subr.mxu1 %v68_v43 }
  0x44   :  { %137 = vmatpush1.xpose.msra.mxu0 %v65_v44  ;;  %207 = vmatpush1.xpose.msra.mxu1 %v67_v45 }
  0x45   :  { %138 = vmatprep.subr.mxu0 %v62_v46  ;;  %208 = vmatprep.subr.mxu1 %v64_v47 }
  0x48   :  { %139 = vmatpush1.xpose.msra.mxu0 %v61_v48  ;;  %209 = vmatpush1.xpose.msra.mxu1 %v63_v49 }
  0x49   :  { %140 = vmatprep.subr.mxu0 %v58_v50  ;;  %210 = vmatprep.subr.mxu1 %v60_v51 }
  0x4c   :  { %141 = vmatpush1.xpose.msra.mxu0 %v57_v52  ;;  %211 = vmatpush1.xpose.msra.mxu1 %v59_v53 }
  0x4d   :  { %142 = vmatprep.subr.mxu0 %v54_v54  ;;  %212 = vmatprep.subr.mxu1 %v56_v55 }
  0x50   :  { %143 = vmatpush1.xpose.msra.mxu0 %v53_v56  ;;  %213 = vmatpush1.xpose.msra.mxu1 %v55_v57 }
  0x51   :  { %144 = vmatprep.subr.mxu0 %v50_v58  ;;  %214 = vmatprep.subr.mxu1 %v52_v59 }
  0x54   :  { %145 = vmatpush1.xpose.msra.mxu0 %v49_v60  ;;  %215 = vmatpush1.xpose.msra.mxu1 %v51_v61 }
  0x55   :  { %146 = vmatprep.subr.mxu0 %v46_v62  ;;  %216 = vmatprep.subr.mxu1 %v48_v63 }
  0x58   :  { %147 = vmatpush1.xpose.msra.mxu0 %v45_v0  ;;  %217 = vmatpush1.xpose.msra.mxu1 %v47_v1 }
  0x5b   :  { %181 = vmatmul.mubr.f32.vlgmr.msra.gmra.mxu0 %v41_v2  ;;  %251 = vmatmul.mubr.f32.vlgmr.msra.gmra.mxu1 %v43_v3 }
 0x11b   :  { %v182_v5 = vpop.f32.mrf.mxu0  ;;  %v252_v6 = vpop.f32.mrf.mxu1 }
 0x11c   :  { %v183_v7 = vadd.f32 %v273_v4, %v182_v5 }
 0x11d   :  { %v184_v8 = vpop.f32.mrf.mxu0  ;;  %v254_v9 = vpop.f32.mrf.mxu1 }
 0x11e   :  { %v253_v10 = vadd.f32 %v252_v6, %v183_v7 }
 0x120   :  { %256 = vst [vmem:[#allocation7] sm:$0xff] %v253_v10 }
 0x121   :  { %330 = shalt.err (!%p327_p0)
}
 0x122   :  { %266 = dma.vmem_to_hbm [thread:$0]  %s264_s25, 128, %s385_s3, [#allocation4]  }
 0x123   :  { %343 = dma.done.wait [#allocation4], 128  }
 0x124   :  { %344 = vsyncadd [#allocation4], 4294967168 }
 0x125   :  { %270 = vsyncpa [#allocation3], 1 }
 0x126   :  { %271 = vsyncpa [#allocation6], 1 }
 0x127   :  { %272 = vsyncpa [#allocation4], 1 }

</bundles_post_ra>
